<compile_context>
chip_gen: v5e
topology: v5e:2x2
jax: 0.10.0
libtpu: 0.0.40
codegen_flags: <defaults>
</compile_context>

<pallas_src>
import jax
import jax.numpy as jnp
import numpy as np
from jax.experimental import pallas as pl
from jax.experimental.pallas import tpu as pltpu

HIDDEN = 32       # hidden_size (small toy size consistent with the module)
OUTPUT = 64       # output_size (vocab)
MAXLEN = 10       # max_length (attention span)
T_STEPS = 8       # decode steps fused into one pallas_call

ATT_PAD = 128     # attn-logit / attn-weight lanes padded to one full vreg width
OUT_PAD = 128     # output-vocab lanes padded to one full vreg width
NEG = -1e30       # "-inf" pad bias: exp underflows to exactly 0, no NaN risk


def attn_decoder_seq_kernel(
    toks_ref,                 # SMEM (T,) int32 (scalar prefetch)
    emb_ref,                  # (OUTPUT, H)  embedding table (VMEM resident)
    h0_ref,                   # (1, H)       initial hidden state
    enc_ref,                  # (ATT_PAD, H) encoder outputs, zero-padded rows
    wa_ref, ba_ref,           # fused attn Linear:   (2H, ATT_PAD), (1, ATT_PAD)
    wc_ref, bc_ref,           # fused attn_combine:  (2H, H),       (1, H)
    wg_ref, bg_ref,           # fused GRU gates:     (2H, 4H),      (1, 4H)
    wo_ref, bo_ref,           # out Linear:          (H, OUT_PAD),  (1, OUT_PAD)
    logp_ref,                 # out (1, 1, OUT_PAD)  per-step log-probs
    hid_ref,                  # out (1, 1, H)        per-step hidden state
    attnw_ref,                # out (1, 1, ATT_PAD)  per-step attention weights
    h_scr,                    # VMEM (1, H) recurrent carry
):
    H = HIDDEN
    t = pl.program_id(0)

    @pl.when(t == 0)
    def _():
        h_scr[...] = h0_ref[...]

    tok = toks_ref[t]
    tok = jnp.minimum(jnp.maximum(tok, 0), OUTPUT - 1)   # clamp (nn.Embedding would raise OOB)

    # ---- embedding lookup: single dynamic-row load. dropout = identity (eval mode). ----
    # TODO(synk): training-mode stochastic dropout would need pltpu.prng_seed/prng_random_bits.
    x = emb_ref[pl.ds(tok, 1), :]                        # (1, H)
    h = h_scr[...]                                       # (1, H)

    # ---- attn_weights = softmax(Linear(cat(x, h))), lanes padded to 128 with -1e30 bias ----
    xh = jnp.concatenate([x, h], axis=1)                 # (1, 2H)
    attn_logits = jnp.dot(xh, wa_ref[...], preferred_element_type=jnp.float32) + ba_ref[...]
    m = jnp.max(attn_logits, axis=1, keepdims=True)
    e = jnp.exp(attn_logits - m)                         # pad lanes underflow to exactly 0
    attn_w = e * pl.reciprocal(jnp.sum(e, axis=1, keepdims=True), approx=True)   # (1, ATT_PAD)

    # ---- attn_applied = attn_weights @ encoder_outputs (padded rows are zero) ----
    attn_applied = jnp.dot(attn_w, enc_ref[...], preferred_element_type=jnp.float32)  # (1, H)

    # ---- attn_combine(cat(x, attn_applied)) + ReLU ----
    xa = jnp.concatenate([x, attn_applied], axis=1)      # (1, 2H)
    g = jnp.maximum(
        jnp.dot(xa, wc_ref[...], preferred_element_type=jnp.float32) + bc_ref[...], 0.0)

    # ---- GRU cell: one (1,2H)@(2H,4H) matmul yields r|z|n_i|n_h pre-activations ----
    gh = jnp.concatenate([g, h], axis=1)                 # (1, 2H)
    gates = jnp.dot(gh, wg_ref[...], preferred_element_type=jnp.float32) + bg_ref[...]  # (1,4H)
    rz = jax.nn.sigmoid(gates[:, :2 * H])                # single sigmoid for r and z
    r = rz[:, :H]
    z = rz[:, H:]
    n = jnp.tanh(gates[:, 2 * H:3 * H] + r * gates[:, 3 * H:])
    h_new = (1.0 - z) * n + z * h                        # (1, H)
    h_scr[...] = h_new

    # ---- output = log_softmax(out(h_new)); pad columns biased to -1e30 ----
    logits = jnp.dot(h_new, wo_ref[...], preferred_element_type=jnp.float32) + bo_ref[...]
    mo = jnp.max(logits, axis=1, keepdims=True)
    lse = jnp.log(jnp.sum(jnp.exp(logits - mo), axis=1, keepdims=True)) + mo

    logp_ref[...] = (logits - lse).reshape(1, 1, OUT_PAD)
    hid_ref[...] = h_new.reshape(1, 1, H)
    attnw_ref[...] = attn_w.reshape(1, 1, ATT_PAD)


def attn_decoder_forward_seq(tokens, hidden0, encoder_outputs, kp):
    """tokens: (T,) int32; hidden0: (1,1,H); encoder_outputs: (MAXLEN,H).
    Returns (logp (T,OUTPUT), hiddens (T,H), attn_weights (T,MAXLEN))."""
    T = int(tokens.shape[0])
    H = HIDDEN
    h0 = hidden0.reshape(1, H).astype(jnp.float32)
    enc_pad = jnp.zeros((ATT_PAD, H), jnp.float32).at[:MAXLEN].set(encoder_outputs)

    def const(shape):
        return pl.BlockSpec(shape, lambda t, toks: (0,) * len(shape))

    grid_spec = pltpu.PrefetchScalarGridSpec(
        num_scalar_prefetch=1,
        grid=(T,),
        in_specs=[
            const((OUTPUT, H)),                               # embedding table
            const((1, H)),                                    # initial hidden
            const((ATT_PAD, H)),                              # encoder outputs (padded)
            const((2 * H, ATT_PAD)), const((1, ATT_PAD)),     # fused attn
            const((2 * H, H)),       const((1, H)),           # fused combine
            const((2 * H, 4 * H)),   const((1, 4 * H)),       # fused GRU
            const((H, OUT_PAD)),     const((1, OUT_PAD)),     # out projection
        ],
        out_specs=[
            pl.BlockSpec((1, 1, OUT_PAD), lambda t, toks: (t, 0, 0)),
            pl.BlockSpec((1, 1, H),       lambda t, toks: (t, 0, 0)),
            pl.BlockSpec((1, 1, ATT_PAD), lambda t, toks: (t, 0, 0)),
        ],
        scratch_shapes=[pltpu.VMEM((1, H), jnp.float32)],
    )

    logp_p, hids, attnw_p = pl.pallas_call(
        attn_decoder_seq_kernel,
        out_shape=(
            jax.ShapeDtypeStruct((T, 1, OUT_PAD), jnp.float32),
            jax.ShapeDtypeStruct((T, 1, H), jnp.float32),
            jax.ShapeDtypeStruct((T, 1, ATT_PAD), jnp.float32),
        ),
        grid_spec=grid_spec,
        compiler_params=pltpu.CompilerParams(dimension_semantics=("arbitrary",)),
    )(tokens, kp['emb'], h0, enc_pad,
      kp['wa'], kp['ba'], kp['wc'], kp['bc'],
      kp['wg'], kp['bg'], kp['wo'], kp['bo'])

    return logp_p[:, 0, :OUTPUT], hids[:, 0, :], attnw_p[:, 0, :MAXLEN]


def init_params(key):
    """PyTorch-layout parameters (weights are (out_features, in_features))."""
    ks = jax.random.split(key, 11)

    def lin(k, fan_in, shape):
        bound = 1.0 / np.sqrt(fan_in)
        return jax.random.uniform(k, shape, jnp.float32, -bound, bound)

    H = HIDDEN
    return dict(
        emb=jax.random.normal(ks[0], (OUTPUT, H), jnp.float32),          # nn.Embedding
        w_attn=lin(ks[1], 2 * H, (MAXLEN, 2 * H)), b_attn=lin(ks[2], 2 * H, (MAXLEN,)),
        w_comb=lin(ks[3], 2 * H, (H, 2 * H)),      b_comb=lin(ks[4], 2 * H, (H,)),
        w_ih=lin(ks[5], H, (3 * H, H)),            w_hh=lin(ks[6], H, (3 * H, H)),
        b_ih=lin(ks[7], H, (3 * H,)),              b_hh=lin(ks[8], H, (3 * H,)),
        w_out=lin(ks[9], H, (OUTPUT, H)),          b_out=lin(ks[10], H, (OUTPUT,)),
    )


def pack_params(p):
    """One-time (host/XLA side) packing into the fused kernel layout — zero kernel cost."""
    H = HIDDEN
    wa = jnp.zeros((2 * H, ATT_PAD), jnp.float32).at[:, :MAXLEN].set(p['w_attn'].T)
    ba = jnp.full((1, ATT_PAD), NEG, jnp.float32).at[0, :MAXLEN].set(p['b_attn'])
    wc = p['w_comb'].T.astype(jnp.float32)                               # (2H, H)
    bc = p['b_comb'].reshape(1, H)
    wir, wiz, win = (p['w_ih'][i * H:(i + 1) * H].T for i in range(3))   # gate order r,z,n
    whr, whz, whn = (p['w_hh'][i * H:(i + 1) * H].T for i in range(3))
    zH = jnp.zeros((H, H), jnp.float32)
    wg = jnp.concatenate([
        jnp.concatenate([wir, whr], axis=0),       # r
        jnp.concatenate([wiz, whz], axis=0),       # z
        jnp.concatenate([win, zH], axis=0),        # n (input part)
        jnp.concatenate([zH, whn], axis=0),        # n (hidden part, gated by r)
    ], axis=1)                                     # (2H, 4H) = (64, 128)
    bi, bh = p['b_ih'], p['b_hh']
    bg = jnp.concatenate([bi[:H] + bh[:H], bi[H:2 * H] + bh[H:2 * H],
                          bi[2 * H:], bh[2 * H:]]).reshape(1, 4 * H)
    wo = jnp.zeros((H, OUT_PAD), jnp.float32).at[:, :OUTPUT].set(p['w_out'].T)
    bo = jnp.full((1, OUT_PAD), NEG, jnp.float32).at[0, :OUTPUT].set(p['b_out'])
    return dict(emb=p['emb'], wa=wa, ba=ba, wc=wc, bc=bc, wg=wg, bg=bg, wo=wo, bo=bo)


def reference_forward_seq(tokens, hidden0, enc, p):
    """Pure-JAX mirror of the PyTorch forward, looped over T steps (dropout = identity)."""
    H = HIDDEN
    h = hidden0.reshape(1, H)
    logps, hs, aws = [], [], []
    for t in range(int(tokens.shape[0])):
        x = p['emb'][tokens[t]][None, :]
        attn_w = jax.nn.softmax(
            jnp.concatenate([x, h], axis=1) @ p['w_attn'].T + p['b_attn'], axis=1)
        attn_applied = attn_w @ enc
        g = jax.nn.relu(
            jnp.concatenate([x, attn_applied], axis=1) @ p['w_comb'].T + p['b_comb'])
        gi = g @ p['w_ih'].T + p['b_ih']
        gh = h @ p['w_hh'].T + p['b_hh']
        r = jax.nn.sigmoid(gi[:, :H] + gh[:, :H])
        z = jax.nn.sigmoid(gi[:, H:2 * H] + gh[:, H:2 * H])
        n = jnp.tanh(gi[:, 2 * H:] + r * gh[:, 2 * H:])
        h = (1.0 - z) * n + z * h
        logits = h @ p['w_out'].T + p['b_out']
        logps.append(jax.nn.log_softmax(logits, axis=1))
        hs.append(h)
        aws.append(attn_w)
    return jnp.concatenate(logps, 0), jnp.concatenate(hs, 0), jnp.concatenate(aws, 0)


if __name__ == "__main__":
    key = jax.random.PRNGKey(0)
    kp, kh, ke, kt = jax.random.split(key, 4)

    params = init_params(kp)
    kparams = pack_params(params)

    tokens = jax.random.randint(kt, (T_STEPS,), 0, OUTPUT, dtype=jnp.int32)
    hidden0 = jax.random.normal(kh, (1, 1, HIDDEN), jnp.float32)
    encoder_outputs = jax.random.normal(ke, (MAXLEN, HIDDEN), jnp.float32)

    logp, hids, attn_w = attn_decoder_forward_seq(tokens, hidden0, encoder_outputs, kparams)
    jax.block_until_ready((logp, hids, attn_w))

    # correctness check against a pure-JAX step-by-step reference (approx reciprocal in
    # the attention softmax => slightly relaxed tolerance)
    r_logp, r_h, r_aw = reference_forward_seq(tokens, hidden0, encoder_outputs, params)
    assert np.allclose(np.asarray(logp),   np.asarray(r_logp), atol=5e-3, rtol=5e-3), "log_softmax mismatch"
    assert np.allclose(np.asarray(hids),   np.asarray(r_h),    atol=5e-3, rtol=5e-3), "hidden mismatch"
    assert np.allclose(np.asarray(attn_w), np.asarray(r_aw),   atol=5e-3, rtol=5e-3), "attn_weights mismatch"

    print("KERNEL_OK")
</pallas_src>

<mosaic_0001>
module attributes {stable_mosaic.version = 11 : i64} {
  func.func @attn_decoder_seq_kernel(%arg0: i32, %arg1: memref<8xi32, #tpu.memory_space<smem>>, %arg2: memref<64x32xf32, #tpu.memory_space<vmem>>, %arg3: memref<1x32xf32, #tpu.memory_space<vmem>>, %arg4: memref<128x32xf32, #tpu.memory_space<vmem>>, %arg5: memref<64x128xf32, #tpu.memory_space<vmem>>, %arg6: memref<1x128xf32, #tpu.memory_space<vmem>>, %arg7: memref<64x32xf32, #tpu.memory_space<vmem>>, %arg8: memref<1x32xf32, #tpu.memory_space<vmem>>, %arg9: memref<64x128xf32, #tpu.memory_space<vmem>>, %arg10: memref<1x128xf32, #tpu.memory_space<vmem>>, %arg11: memref<32x128xf32, #tpu.memory_space<vmem>>, %arg12: memref<1x128xf32, #tpu.memory_space<vmem>>, %arg13: memref<1x1x128xf32, #tpu.memory_space<vmem>>, %arg14: memref<1x1x32xf32, #tpu.memory_space<vmem>>, %arg15: memref<1x1x128xf32, #tpu.memory_space<vmem>>, %arg16: memref<1x32xf32, #tpu.memory_space<vmem>>) attributes {dimension_semantics = [#tpu.dimension_semantics<arbitrary>], iteration_bounds = array<i64: 8>, scalar_prefetch = 1 : i64, scratch_operands = 1 : i64, tpu.core_type = #tpu.core_type<tc>, window_params = [{pipeline_mode = #tpu.pipeline_mode<synchronous>, transform_indices = @transform_0, window_bounds = array<i64: 64, 32>}, {pipeline_mode = #tpu.pipeline_mode<synchronous>, transform_indices = @transform_1, window_bounds = array<i64: 1, 32>}, {pipeline_mode = #tpu.pipeline_mode<synchronous>, transform_indices = @transform_2, window_bounds = array<i64: 128, 32>}, {pipeline_mode = #tpu.pipeline_mode<synchronous>, transform_indices = @transform_3, window_bounds = array<i64: 64, 128>}, {pipeline_mode = #tpu.pipeline_mode<synchronous>, transform_indices = @transform_4, window_bounds = array<i64: 1, 128>}, {pipeline_mode = #tpu.pipeline_mode<synchronous>, transform_indices = @transform_5, window_bounds = array<i64: 64, 32>}, {pipeline_mode = #tpu.pipeline_mode<synchronous>, transform_indices = @transform_6, window_bounds = array<i64: 1, 32>}, {pipeline_mode = #tpu.pipeline_mode<synchronous>, transform_indices = @transform_7, window_bounds = array<i64: 64, 128>}, {pipeline_mode = #tpu.pipeline_mode<synchronous>, transform_indices = @transform_8, window_bounds = array<i64: 1, 128>}, {pipeline_mode = #tpu.pipeline_mode<synchronous>, transform_indices = @transform_9, window_bounds = array<i64: 32, 128>}, {pipeline_mode = #tpu.pipeline_mode<synchronous>, transform_indices = @transform_10, window_bounds = array<i64: 1, 128>}, {transform_indices = @transform_11, window_bounds = array<i64: 1, 1, 128>}, {transform_indices = @transform_12, window_bounds = array<i64: 1, 1, 32>}, {transform_indices = @transform_13, window_bounds = array<i64: 1, 1, 128>}]} {
    %c0_i32 = arith.constant 0 : i32
    %0 = arith.cmpi eq, %arg0, %c0_i32 : i32
    %1 = arith.extui %0 : i1 to i32
    %c0_i32_0 = arith.constant 0 : i32
    %2 = arith.cmpi ne, %1, %c0_i32_0 : i32
    scf.if %2 {
      %c0_44 = arith.constant 0 : index
      %c0_45 = arith.constant 0 : index
      %79 = vector.load %arg3[%c0_44, %c0_45] : memref<1x32xf32, #tpu.memory_space<vmem>>, vector<1x32xf32>
      %c0_46 = arith.constant 0 : index
      %c0_47 = arith.constant 0 : index
      %80 = vector.load %arg16[%c0_46, %c0_47] : memref<1x32xf32, #tpu.memory_space<vmem>>, vector<1x32xf32>
      tpu.vector_store %arg16[%c0_46, %c0_47], %79 {strides = array<i32>} : memref<1x32xf32, #tpu.memory_space<vmem>>, vector<1x32xf32>,
    } else {
    }
    %3 = arith.index_cast %arg0 : i32 to index
    %4 = memref.load %arg1[%3] : memref<8xi32, #tpu.memory_space<smem>>
    %c0_i32_1 = arith.constant 0 : i32
    %5 = arith.maxsi %4, %c0_i32_1 : i32
    %c63_i32 = arith.constant 63 : i32
    %6 = arith.minsi %5, %c63_i32 : i32
    %7 = arith.index_cast %6 : i32 to index
    %c0 = arith.constant 0 : index
    %8 = vector.load %arg2[%7, %c0] : memref<64x32xf32, #tpu.memory_space<vmem>>, vector<1x32xf32>
    %c0_2 = arith.constant 0 : index
    %c0_3 = arith.constant 0 : index
    %9 = vector.load %arg16[%c0_2, %c0_3] : memref<1x32xf32, #tpu.memory_space<vmem>>, vector<1x32xf32>
    %10 = tpu.concatenate %8, %9 in 1 : vector<1x32xf32>, vector<1x32xf32> -> vector<1x64xf32>
    %c0_4 = arith.constant 0 : index
    %c0_5 = arith.constant 0 : index
    %11 = vector.load %arg5[%c0_4, %c0_5] : memref<64x128xf32, #tpu.memory_space<vmem>>, vector<64x128xf32>
    %cst = arith.constant dense<0.000000e+00> : vector<1x128xf32>
    %12 = tpu.matmul %10, %11, %cst {dimension_numbers = #tpu.dot_dimension_numbers<[1], [0], [0], [1], [0, 0, 1, 1], [], []>} : vector<1x64xf32>, vector<64x128xf32>, vector<1x128xf32> -> vector<1x128xf32>
    %c0_6 = arith.constant 0 : index
    %c0_7 = arith.constant 0 : index
    %13 = vector.load %arg6[%c0_6, %c0_7] : memref<1x128xf32, #tpu.memory_space<vmem>>, vector<1x128xf32>
    %14 = arith.addf %12, %13 : vector<1x128xf32>
    %cst_8 = arith.constant dense<0xFF800000> : vector<1xf32>
    %15 = vector.multi_reduction <maximumf>, %14, %cst_8 [1] : vector<1x128xf32> to vector<1xf32>
    %16 = vector.shape_cast %15 : vector<1xf32> to vector<1x1xf32>
    %17 = vector.broadcast %16 : vector<1x1xf32> to vector<1x128xf32>
    %18 = arith.subf %14, %17 : vector<1x128xf32>
    %19 = math.exp %18 : vector<1x128xf32>
    %cst_9 = arith.constant dense<0.000000e+00> : vector<1xf32>
    %20 = vector.multi_reduction <add>, %19, %cst_9 [1] : vector<1x128xf32> to vector<1xf32>
    %21 = vector.shape_cast %20 : vector<1xf32> to vector<1x1xf32>
    %22 = tpu.reciprocal %21 {approx = true} : vector<1x1xf32> -> vector<1x1xf32>
    %23 = vector.broadcast %22 : vector<1x1xf32> to vector<1x128xf32>
    %24 = arith.mulf %19, %23 : vector<1x128xf32>
    %c0_10 = arith.constant 0 : index
    %c0_11 = arith.constant 0 : index
    %25 = vector.load %arg4[%c0_10, %c0_11] : memref<128x32xf32, #tpu.memory_space<vmem>>, vector<128x32xf32>
    %cst_12 = arith.constant dense<0.000000e+00> : vector<1x32xf32>
    %26 = tpu.matmul %24, %25, %cst_12 {dimension_numbers = #tpu.dot_dimension_numbers<[1], [0], [0], [1], [0, 0, 1, 1], [], []>} : vector<1x128xf32>, vector<128x32xf32>, vector<1x32xf32> -> vector<1x32xf32>
    %27 = tpu.concatenate %8, %26 in 1 : vector<1x32xf32>, vector<1x32xf32> -> vector<1x64xf32>
    %c0_13 = arith.constant 0 : index
    %c0_14 = arith.constant 0 : index
    %28 = vector.load %arg7[%c0_13, %c0_14] : memref<64x32xf32, #tpu.memory_space<vmem>>, vector<64x32xf32>
    %cst_15 = arith.constant dense<0.000000e+00> : vector<1x32xf32>
    %29 = tpu.matmul %27, %28, %cst_15 {dimension_numbers = #tpu.dot_dimension_numbers<[1], [0], [0], [1], [0, 0, 1, 1], [], []>} : vector<1x64xf32>, vector<64x32xf32>, vector<1x32xf32> -> vector<1x32xf32>
    %c0_16 = arith.constant 0 : index
    %c0_17 = arith.constant 0 : index
    %30 = vector.load %arg8[%c0_16, %c0_17] : memref<1x32xf32, #tpu.memory_space<vmem>>, vector<1x32xf32>
    %31 = arith.addf %29, %30 : vector<1x32xf32>
    %cst_18 = arith.constant 0.000000e+00 : f32
    %32 = vector.broadcast %cst_18 : f32 to vector<1x32xf32>
    %33 = arith.maximumf %31, %32 : vector<1x32xf32>
    %34 = tpu.concatenate %33, %9 in 1 : vector<1x32xf32>, vector<1x32xf32> -> vector<1x64xf32>
    %c0_19 = arith.constant 0 : index
    %c0_20 = arith.constant 0 : index
    %35 = vector.load %arg9[%c0_19, %c0_20] : memref<64x128xf32, #tpu.memory_space<vmem>>, vector<64x128xf32>
    %cst_21 = arith.constant dense<0.000000e+00> : vector<1x128xf32>
    %36 = tpu.matmul %34, %35, %cst_21 {dimension_numbers = #tpu.dot_dimension_numbers<[1], [0], [0], [1], [0, 0, 1, 1], [], []>} : vector<1x64xf32>, vector<64x128xf32>, vector<1x128xf32> -> vector<1x128xf32>
    %c0_22 = arith.constant 0 : index
    %c0_23 = arith.constant 0 : index
    %37 = vector.load %arg10[%c0_22, %c0_23] : memref<1x128xf32, #tpu.memory_space<vmem>>, vector<1x128xf32>
    %38 = arith.addf %36, %37 : vector<1x128xf32>
    %39 = vector.extract_strided_slice %38 {offsets = [0, 0], sizes = [1, 64], strides = [1, 1]} : vector<1x128xf32> to vector<1x64xf32>
    %40 = arith.negf %39 : vector<1x64xf32>
    %41 = math.exp %40 : vector<1x64xf32>
    %cst_24 = arith.constant 1.000000e+00 : f32
    %42 = vector.broadcast %cst_24 : f32 to vector<1x64xf32>
    %43 = arith.addf %42, %41 : vector<1x64xf32>
    %44 = arith.divf %42, %43 : vector<1x64xf32>
    %45 = vector.extract_strided_slice %44 {offsets = [0, 0], sizes = [1, 32], strides = [1, 1]} : vector<1x64xf32> to vector<1x32xf32>
    %46 = vector.extract_strided_slice %44 {offsets = [0, 32], sizes = [1, 32], strides = [1, 1]} : vector<1x64xf32> to vector<1x32xf32>
    %47 = vector.extract_strided_slice %38 {offsets = [0, 64], sizes = [1, 32], strides = [1, 1]} : vector<1x128xf32> to vector<1x32xf32>
    %48 = vector.extract_strided_slice %38 {offsets = [0, 96], sizes = [1, 32], strides = [1, 1]} : vector<1x128xf32> to vector<1x32xf32>
    %49 = arith.mulf %45, %48 : vector<1x32xf32>
    %50 = arith.addf %47, %49 : vector<1x32xf32>
    %51 = math.tanh %50 : vector<1x32xf32>
    %cst_25 = arith.constant 1.000000e+00 : f32
    %52 = vector.broadcast %cst_25 : f32 to vector<1x32xf32>
    %53 = arith.subf %52, %46 : vector<1x32xf32>
    %54 = arith.mulf %53, %51 : vector<1x32xf32>
    %55 = arith.mulf %46, %9 : vector<1x32xf32>
    %56 = arith.addf %54, %55 : vector<1x32xf32>
    %c0_26 = arith.constant 0 : index
    %c0_27 = arith.constant 0 : index
    %57 = vector.load %arg16[%c0_26, %c0_27] : memref<1x32xf32, #tpu.memory_space<vmem>>, vector<1x32xf32>
    tpu.vector_store %arg16[%c0_26, %c0_27], %56 {strides = array<i32>} : memref<1x32xf32, #tpu.memory_space<vmem>>, vector<1x32xf32>,
    %c0_28 = arith.constant 0 : index
    %c0_29 = arith.constant 0 : index
    %58 = vector.load %arg11[%c0_28, %c0_29] : memref<32x128xf32, #tpu.memory_space<vmem>>, vector<32x128xf32>
    %cst_30 = arith.constant dense<0.000000e+00> : vector<1x128xf32>
    %59 = tpu.matmul %56, %58, %cst_30 {dimension_numbers = #tpu.dot_dimension_numbers<[1], [0], [0], [1], [0, 0, 1, 1], [], []>} : vector<1x32xf32>, vector<32x128xf32>, vector<1x128xf32> -> vector<1x128xf32>
    %c0_31 = arith.constant 0 : index
    %c0_32 = arith.constant 0 : index
    %60 = vector.load %arg12[%c0_31, %c0_32] : memref<1x128xf32, #tpu.memory_space<vmem>>, vector<1x128xf32>
    %61 = arith.addf %59, %60 : vector<1x128xf32>
    %cst_33 = arith.constant dense<0xFF800000> : vector<1xf32>
    %62 = vector.multi_reduction <maximumf>, %61, %cst_33 [1] : vector<1x128xf32> to vector<1xf32>
    %63 = vector.shape_cast %62 : vector<1xf32> to vector<1x1xf32>
    %64 = vector.broadcast %63 : vector<1x1xf32> to vector<1x128xf32>
    %65 = arith.subf %61, %64 : vector<1x128xf32>
    %66 = math.exp %65 : vector<1x128xf32>
    %cst_34 = arith.constant dense<0.000000e+00> : vector<1xf32>
    %67 = vector.multi_reduction <add>, %66, %cst_34 [1] : vector<1x128xf32> to vector<1xf32>
    %68 = vector.shape_cast %67 : vector<1xf32> to vector<1x1xf32>
    %69 = math.log %68 : vector<1x1xf32>
    %70 = arith.addf %69, %63 : vector<1x1xf32>
    %71 = vector.broadcast %70 : vector<1x1xf32> to vector<1x128xf32>
    %72 = arith.subf %61, %71 : vector<1x128xf32>
    %73 = vector.shape_cast %72 : vector<1x128xf32> to vector<1x1x128xf32>
    %c0_35 = arith.constant 0 : index
    %c0_36 = arith.constant 0 : index
    %c0_37 = arith.constant 0 : index
    %74 = vector.load %arg13[%c0_35, %c0_36, %c0_37] : memref<1x1x128xf32, #tpu.memory_space<vmem>>, vector<1x1x128xf32>
    tpu.vector_store %arg13[%c0_35, %c0_36, %c0_37], %73 {strides = array<i32>} : memref<1x1x128xf32, #tpu.memory_space<vmem>>, vector<1x1x128xf32>,
    %75 = vector.shape_cast %56 : vector<1x32xf32> to vector<1x1x32xf32>
    %c0_38 = arith.constant 0 : index
    %c0_39 = arith.constant 0 : index
    %c0_40 = arith.constant 0 : index
    %76 = vector.load %arg14[%c0_38, %c0_39, %c0_40] : memref<1x1x32xf32, #tpu.memory_space<vmem>>, vector<1x1x32xf32>
    tpu.vector_store %arg14[%c0_38, %c0_39, %c0_40], %75 {strides = array<i32>} : memref<1x1x32xf32, #tpu.memory_space<vmem>>, vector<1x1x32xf32>,
    %77 = vector.shape_cast %24 : vector<1x128xf32> to vector<1x1x128xf32>
    %c0_41 = arith.constant 0 : index
    %c0_42 = arith.constant 0 : index
    %c0_43 = arith.constant 0 : index
    %78 = vector.load %arg15[%c0_41, %c0_42, %c0_43] : memref<1x1x128xf32, #tpu.memory_space<vmem>>, vector<1x1x128xf32>
    tpu.vector_store %arg15[%c0_41, %c0_42, %c0_43], %77 {strides = array<i32>} : memref<1x1x128xf32, #tpu.memory_space<vmem>>, vector<1x1x128xf32>,
    return
  }
  func.func @transform_0(%arg0: i32, %arg1: memref<8xi32, #tpu.memory_space<smem>>) -> (i32, i32) {
    %c0_i32 = arith.constant 0 : i32
    %c0_i32_0 = arith.constant 0 : i32
    %c0_i32_1 = arith.constant 0 : i32
    return %c0_i32, %c0_i32_0 : i32, i32
  }
  func.func @transform_1(%arg0: i32, %arg1: memref<8xi32, #tpu.memory_space<smem>>) -> (i32, i32) {
    %c0_i32 = arith.constant 0 : i32
    %c0_i32_0 = arith.constant 0 : i32
    %c0_i32_1 = arith.constant 0 : i32
    return %c0_i32, %c0_i32_0 : i32, i32
  }
  func.func @transform_2(%arg0: i32, %arg1: memref<8xi32, #tpu.memory_space<smem>>) -> (i32, i32) {
    %c0_i32 = arith.constant 0 : i32
    %c0_i32_0 = arith.constant 0 : i32
    %c0_i32_1 = arith.constant 0 : i32
    return %c0_i32, %c0_i32_0 : i32, i32
  }
  func.func @transform_3(%arg0: i32, %arg1: memref<8xi32, #tpu.memory_space<smem>>) -> (i32, i32) {
    %c0_i32 = arith.constant 0 : i32
    %c0_i32_0 = arith.constant 0 : i32
    %c0_i32_1 = arith.constant 0 : i32
    return %c0_i32, %c0_i32_0 : i32, i32
  }
  func.func @transform_4(%arg0: i32, %arg1: memref<8xi32, #tpu.memory_space<smem>>) -> (i32, i32) {
    %c0_i32 = arith.constant 0 : i32
    %c0_i32_0 = arith.constant 0 : i32
    %c0_i32_1 = arith.constant 0 : i32
    return %c0_i32, %c0_i32_0 : i32, i32
  }
  func.func @transform_5(%arg0: i32, %arg1: memref<8xi32, #tpu.memory_space<smem>>) -> (i32, i32) {
    %c0_i32 = arith.constant 0 : i32
    %c0_i32_0 = arith.constant 0 : i32
    %c0_i32_1 = arith.constant 0 : i32
    return %c0_i32, %c0_i32_0 : i32, i32
  }
  func.func @transform_6(%arg0: i32, %arg1: memref<8xi32, #tpu.memory_space<smem>>) -> (i32, i32) {
    %c0_i32 = arith.constant 0 : i32
    %c0_i32_0 = arith.constant 0 : i32
    %c0_i32_1 = arith.constant 0 : i32
    return %c0_i32, %c0_i32_0 : i32, i32
  }
  func.func @transform_7(%arg0: i32, %arg1: memref<8xi32, #tpu.memory_space<smem>>) -> (i32, i32) {
    %c0_i32 = arith.constant 0 : i32
    %c0_i32_0 = arith.constant 0 : i32
    %c0_i32_1 = arith.constant 0 : i32
    return %c0_i32, %c0_i32_0 : i32, i32
  }
  func.func @transform_8(%arg0: i32, %arg1: memref<8xi32, #tpu.memory_space<smem>>) -> (i32, i32) {
    %c0_i32 = arith.constant 0 : i32
    %c0_i32_0 = arith.constant 0 : i32
    %c0_i32_1 = arith.constant 0 : i32
    return %c0_i32, %c0_i32_0 : i32, i32
  }
  func.func @transform_9(%arg0: i32, %arg1: memref<8xi32, #tpu.memory_space<smem>>) -> (i32, i32) {
    %c0_i32 = arith.constant 0 : i32
    %c0_i32_0 = arith.constant 0 : i32
    %c0_i32_1 = arith.constant 0 : i32
    return %c0_i32, %c0_i32_0 : i32, i32
  }
  func.func @transform_10(%arg0: i32, %arg1: memref<8xi32, #tpu.memory_space<smem>>) -> (i32, i32) {
    %c0_i32 = arith.constant 0 : i32
    %c0_i32_0 = arith.constant 0 : i32
    %c0_i32_1 = arith.constant 0 : i32
    return %c0_i32, %c0_i32_0 : i32, i32
  }
  func.func @transform_11(%arg0: i32, %arg1: memref<8xi32, #tpu.memory_space<smem>>) -> (i32, i32, i32) {
    %c0_i32 = arith.constant 0 : i32
    %c0_i32_0 = arith.constant 0 : i32
    %c0_i32_1 = arith.constant 0 : i32
    return %arg0, %c0_i32, %c0_i32_0 : i32, i32, i32
  }
  func.func @transform_12(%arg0: i32, %arg1: memref<8xi32, #tpu.memory_space<smem>>) -> (i32, i32, i32) {
    %c0_i32 = arith.constant 0 : i32
    %c0_i32_0 = arith.constant 0 : i32
    %c0_i32_1 = arith.constant 0 : i32
    return %arg0, %c0_i32, %c0_i32_0 : i32, i32, i32
  }
  func.func @transform_13(%arg0: i32, %arg1: memref<8xi32, #tpu.memory_space<smem>>) -> (i32, i32, i32) {
    %c0_i32 = arith.constant 0 : i32
    %c0_i32_0 = arith.constant 0 : i32
    %c0_i32_1 = arith.constant 0 : i32
    return %arg0, %c0_i32, %c0_i32_0 : i32, i32, i32
  }
}

</mosaic_0001>

<bundles_post_ra>
// kernel: tpu_custom_call.1
= control target key start
LH: loop header
LB: loop body
LE: loop exit
PB: predicated region body
PF: predicated region fallthrough
CT: control target
= control target key end

     0   :  { %s1072_s16 = smov [#allocation4]   ;;  %s1464_s0 = inlined_call_operand.vmem [shape: s32[8], index: 0, kind: input, shape index: {}]   ;;  %s1465_s1 = inlined_call_operand.vmem [shape: f32[64,32], index: 1, kind: input, shape index: {}]   ;;  %s1466_s2 = inlined_call_operand.vmem [shape: f32[1,32], index: 2, kind: input, shape index: {}]   ;;  %s1467_s3 = inlined_call_operand.vmem [shape: f32[128,32], index: 3, kind: input, shape index: {}]   ;;  %s1468_s4 = inlined_call_operand.vmem [shape: f32[64,128], index: 4, kind: input, shape index: {}]   ;;  %s1469_s5 = inlined_call_operand.vmem [shape: f32[1,128], index: 5, kind: input, shape index: {}]   ;;  %s1470_s6 = inlined_call_operand.vmem [shape: f32[64,32], index: 6, kind: input, shape index: {}]   ;;  %s1471_s7 = inlined_call_operand.vmem [shape: f32[1,32], index: 7, kind: input, shape index: {}]   ;;  %s1472_s8 = inlined_call_operand.vmem [shape: f32[64,128], index: 8, kind: input, shape index: {}]   ;;  %s1473_s9 = inlined_call_operand.vmem [shape: f32[1,128], index: 9, kind: input, shape index: {}]   ;;  %s1474_s10 = inlined_call_operand.vmem [shape: f32[32,128], index: 10, kind: input, shape index: {}]   ;;  %s1475_s11 = inlined_call_operand.vmem [shape: f32[1,128], index: 11, kind: input, shape index: {}]   ;;  %s1476_s12 = inlined_call_operand.hbm [shape: f32[8,1,128], index: 12, kind: output, shape index: {0}]   ;;  %s1477_s13 = inlined_call_operand.hbm [shape: f32[8,1,32], index: 13, kind: output, shape index: {1}]   ;;  %s1478_s14 = inlined_call_operand.hbm [shape: f32[8,1,128], index: 14, kind: output, shape index: {2}]  }
   0x1   :  { %1483 = sst [smem:[#allocation15_spill]] %s1465_s1  ;;  %s21_s15 = sshll.u32 %s1464_s0, 4  ;;  %s22_s15 = int_to_ptr.vmem [resolvable:$true] %s21_s15 }
   0x2   :  { %1484 = sst [smem:[#allocation16_spill]] %s1466_s2 }
   0x3   :  { %1485 = sst [smem:[#allocation17_spill]] %s1467_s3 }
   0x4   :  { %1486 = sst [smem:[#allocation18_spill]] %s1468_s4 }
   0x5   :  { %1487 = sst [smem:[#allocation19_spill]] %s1469_s5 }
   0x6   :  { %24 = dma.vmem_to_smem %s22_s15, 16, %s1072_s16, [#allocation3] }
   0x7   :  { %1046 = dma.done.wait [#allocation3], 16 }
   0x8   :  { %1047 = vsyncadd [#allocation3], 4294967280 }
   0x9   :  { %27 = sfence }
   0xa   :  { %28 = vsyncpa [#allocation6], 0 }
   0xb   :  { %30 = vsyncpa [#allocation6 + $0x1], 0 }
   0xc   :  { %31 = vsyncpa [#allocation8], 0 }
   0xd   :  { %33 = vsyncpa [#allocation8 + $0x1], 0  ;;  %s1154_s17 = smov 0   ;;  %s1156_s18 = smov 0  }
   0xe   :  { %s1158_s19 = smov 0   ;;  %s1160_s20 = smov 0  }
   0xf LB: > { %1488 = sst [smem:[#allocation13_spill]] %s1066_s19  ;;  %s1175_s0 = sadd.s32 4294967295, %s1070_s20   ;;  %s1070_s20 = sphi %s1160_s20, %s1509_s20   ;;  %s1066_s19 = sphi %s1158_s19, %s1506_s19   ;;  %s1062_s18 = sphi %s1156_s18, %s1508_s18   ;;  %s1058_s17 = sphi %s1154_s17, %s1507_s17  }
  0x10   : > { %s1479_s21 = sadd.s32 4294967294, %s1070_s20   ;;  %s1179_s22 = sadd.s32 1, %s1070_s20  }
  0x11   : > { %s277_s23 = sadd.s32 1, %s1066_s19  ;;  %s274_s24 = ssub.s32 %s1070_s20, %s1179_s22 }
  0x12   : > { %p287_p0 = scmp.ne.s32.totalorder %s1066_s19, %s1062_s18  ;;  %p275_p1 = scmp.eq.s32.totalorder %s274_s24, 0 }
  0x13   : > { %p288_p2 = scmp.eq.s32.totalorder %s1175_s0, 7  ;;  %p293_p3 = scmp.ne.s32.totalorder %s1062_s18, %s1058_s17 }
  0x14   : > { %p294_p4 = scmp.eq.s32.totalorder %s1479_s21, 7  ;;  %p850_p7 = scmp.ge.s32.totalorder %s1070_s20, 1 }
  0x15   : > { %s1192_s25 = scalar_select %p275_p1, %s1066_s19, %s277_s23  }
  0x16   : > { %p1194_p5 = por %p288_p2, %p287_p0  ;;  %p1198_p6 = por %p294_p4, %p293_p3 }
  0x17   : > { %1489 = sst [smem:[#allocation14_spill]] %s1192_s25  ;;  %p397_p8 = scmp.lt.s32.totalorder %s1070_s20, 9 }
  0x19   : > { %p398_p9 = pnand %p850_p7, %p397_p8 }
  0x1a   : > { %s1205_s28 = sand.u32 (!%p398_p9), 1, %s1062_s18   ;;  %p851_p10 = scmp.ne.s32.totalorder (!%p398_p9), %s1175_s0, 0 }
  0x1b   : > { %401 = sbr.rel (%p398_p9) target bundleno = 1826 (0x722), region = 64 }
  0x20   : > { %446 = sbr.rel (%p851_p10) target bundleno = 40 (0x28), region = 68  ;;  %s1492_s2 = sld [smem:[#allocation16_spill]] (!%p851_p10) }
  0x25   : > { %vm448_vm0 = vcmask 253952  }
  0x26   : > { %v447_v0 = vld [vmem:[%s1492_s2] sm:$0x1] }
  0x27   : > { %449 = vst.msk [vmem:[#allocation2] sm:$0x1] %vm448_vm0, %v447_v0 }
  0x28 PF: > { %s1493_s4 = sld [smem:[#allocation18_spill]]  ;;  %s1480_s30 = smov 32   ;;  %vm463_vm1 = vcmask 261120   ;;  %vm474_vm2 = vcmask 523264   ;;  %vm498_vm3 = vcmask 1040384   ;;  %v558_v41 = vld [vmem:[%s1470_s6 + $0x38] sm:$0xff] }
  0x29   : > { %s450_s16 = sld [smem:[#allocation4 + %s1175_s0]]  ;;  %s1497_s15 = scalar_lea.vmem [#allocation9], %s1205_s28  ;;  %v557_v42 = vld [vmem:[%s1470_s6 + $0x30] sm:$0xff]  ;;  %571 = vmatpush.msra.mxu2 %v558_v41  ;;  %v556_v43 = vld [vmem:[%s1470_s6 + $0x28] sm:$0xff]  ;;  %v555_v44 = vld [vmem:[%s1470_s6 + $0x20] sm:$0xff]  ;;  %vm659_vm8 = vcmask 253952  }
  0x2a   : > { %s1494_s1 = sld [smem:[#allocation15_spill]]  ;;  %v554_v45 = vld [vmem:[%s1470_s6 + $0x18] sm:$0xff]  ;;  %v553_v46 = vld [vmem:[%s1470_s6 + $0x10] sm:$0xff]  ;;  %v552_v47 = vld [vmem:[%s1470_s6 + $0x8] sm:$0xff]  ;;  %s1075_s25 = smov 96  }
  0x2b   : > { %s1495_s5 = sld [smem:[#allocation19_spill]]  ;;  %572 = vmatpush.msra.mxu2 %v557_v42  ;;  %v551_v49 = vld [vmem:[%s1470_s6] sm:$0xff]  ;;  %v592_v50 = vld [vmem:[%s1472_s8 + $0x38] sm:$0xff]  ;;  %v591_v51 = vld [vmem:[%s1472_s8 + $0x30] sm:$0xff]  ;;  %s734_s2 = scalar_lea.hbm %s1477_s13, %s1175_s0 }
  0x2c   : > { %s1496_s3 = sld [smem:[#allocation17_spill]]  ;;  %605 = vmatpush.msra.mxu3 %v592_v50  ;;  %v590_v52 = vld [vmem:[%s1472_s8 + $0x28] sm:$0xff]  ;;  %v589_v53 = vld [vmem:[%s1472_s8 + $0x20] sm:$0xff]  ;;  %v588_v54 = vld [vmem:[%s1472_s8 + $0x18] sm:$0xff]  ;;  %s738_s21 = sshll.u32 %s734_s2, 4  ;;  %s739_s21 = int_to_ptr.hbm [resolvable:$true] %s738_s21 }
  0x2d   : > { %573 = vmatpush.msra.mxu2 %v556_v43  ;;  %v587_v57 = vld [vmem:[%s1472_s8 + $0x10] sm:$0xff]  ;;  %v586_v58 = vld [vmem:[%s1472_s8 + $0x8] sm:$0xff]  ;;  %v585_v59 = vld [vmem:[%s1472_s8] sm:$0xff] }
  0x2e   : > { %v919_v1 = vld [vmem:[#allocation2] ss:$0 sm:$0xff]  ;;  %v472_v2 = vld [vmem:[%s1493_s4 + $0x38] sm:$0xff]  ;;  %v471_v3 = vld [vmem:[%s1493_s4 + $0x30] sm:$0xff]  ;;  %606 = vmatpush.msra.mxu3 %v591_v51 }
  0x2f   : > { %486 = vmatpush.msra.mxu0 %v472_v2  ;;  %460 = vrot.lane.b32.xlu0 %v919_v1, %s1480_s30  ;;  %v470_v4 = vld [vmem:[%s1493_s4 + $0x28] sm:$0xff]  ;;  %v469_v5 = vld [vmem:[%s1493_s4 + $0x20] sm:$0xff]  ;;  %v468_v6 = vld [vmem:[%s1493_s4 + $0x18] sm:$0xff]  ;;  %p451_p11 = scmp.gt.s32.totalorder %s450_s16, 0  ;;  %p852_p12 = scmp.lt.s32.totalorder %s450_s16, 63 }
  0x30   : > { %v467_v7 = vld [vmem:[%s1493_s4 + $0x10] sm:$0xff]  ;;  %v466_v8 = vld [vmem:[%s1493_s4 + $0x8] sm:$0xff]  ;;  %v465_v9 = vld [vmem:[%s1493_s4] sm:$0xff]  ;;  %574 = vmatpush.msra.mxu2 %v555_v44  ;;  %607 = vmatpush.msra.mxu3 %v590_v52  ;;  %s1499_s30 = scalar_lea.vmem [#allocation7], %s1205_s28 }
  0x31   : > { %487 = vmatpush.msra.mxu0 %v471_v3  ;;  %s1511_s16 = smov (!%p451_p11, %s450_s16), 0  ;;  %v473_v13 = vld [vmem:[%s1495_s5] sm:$0x1] }
  0x32   : > { %s1513_s16 = smov (!%p852_p12, %s1511_s16), 63  ;;  %v525_v17 = vld [vmem:[%s1496_s3 + $0x78] sm:$0xff]  ;;  %v524_v18 = vld [vmem:[%s1496_s3 + $0x70] sm:$0xff]  ;;  %v523_v19 = vld [vmem:[%s1496_s3 + $0x68] sm:$0xff]  ;;  %575 = vmatpush.msra.mxu2 %v554_v45  ;;  %608 = vmatpush.msra.mxu3 %v589_v53 }
  0x33   : > { %488 = vmatpush.msra.mxu0 %v470_v4  ;;  %s455_s24 = scalar_lea.vmem %s1494_s1, %s1513_s16  ;;  %526 = vmatpush.msra.mxu1 %v525_v17  ;;  %v522_v20 = vld [vmem:[%s1496_s3 + $0x60] sm:$0xff]  ;;  %v521_v21 = vld [vmem:[%s1496_s3 + $0x58] sm:$0xff]  ;;  %v520_v22 = vld [vmem:[%s1496_s3 + $0x50] sm:$0xff]  ;;  %s1500_s16 = smov %s1499_s30 }
  0x34   : > { %v1243_v10 = vld [vmem:[%s455_s24] sm:$0x1]  ;;  %v519_v23 = vld [vmem:[%s1496_s3 + $0x48] sm:$0xff]  ;;  %v517_v25 = vld [vmem:[%s1496_s3 + $0x38] sm:$0xff]  ;;  %576 = vmatpush.msra.mxu2 %v553_v46  ;;  %s1498_s24 = smov 32   ;;  %609 = vmatpush.msra.mxu3 %v588_v54  ;;  %s736_s23 = sshll.u32 %s1500_s16, 4  ;;  %s737_s23 = int_to_ptr.vmem [resolvable:$true] %s736_s23 }
  0x35   : > { %489 = vmatpush.msra.mxu0 %v469_v5  ;;  %527 = vmatpush.msra.mxu1 %v524_v18  ;;  %v518_v24 = vld [vmem:[%s1496_s3 + $0x40] sm:$0xff]  ;;  %v516_v26 = vld [vmem:[%s1496_s3 + $0x30] sm:$0xff]  ;;  %v515_v27 = vld [vmem:[%s1496_s3 + $0x28] sm:$0xff] }
  0x36   : > { %v514_v33 = vld [vmem:[%s1496_s3 + $0x20] sm:$0xff]  ;;  %v513_v34 = vld [vmem:[%s1496_s3 + $0x18] sm:$0xff]  ;;  %v512_v35 = vld [vmem:[%s1496_s3 + $0x10] sm:$0xff]  ;;  %577 = vmatpush.msra.mxu2 %v552_v47  ;;  %610 = vmatpush.msra.mxu3 %v587_v57 }
  0x37   : > { %490 = vmatpush.msra.mxu0 %v468_v6  ;;  %528 = vmatpush.msra.mxu1 %v523_v19  ;;  %v511_v36 = vld [vmem:[%s1496_s3 + $0x8] sm:$0xff]  ;;  %v510_v37 = vld [vmem:[%s1496_s3] sm:$0xff] }
  0x38   : > { %578 = vmatpush.msra.mxu2 %v551_v49  ;;  %611 = vmatpush.msra.mxu3 %v586_v58  ;;  %v559_v60 = vld [vmem:[%s1471_s7] sm:$0x1] }
  0x39   : > { %491 = vmatpush.msra.mxu0 %v467_v7  ;;  %529 = vmatpush.msra.mxu1 %v522_v20  ;;  %v593_v1 = vld [vmem:[%s1473_s9] sm:$0x1] }
  0x3a   : > { %612 = vmatpush.msra.mxu3 %v585_v59 }
  0x3b   : > { %492 = vmatpush.msra.mxu0 %v466_v8  ;;  %530 = vmatpush.msra.mxu1 %v521_v21 }
  0x3d   : > { %493 = vmatpush.msra.mxu0 %v465_v9  ;;  %531 = vmatpush.msra.mxu1 %v520_v22 }
  0x3f   : > { %532 = vmatpush.msra.mxu1 %v519_v23  ;;  %v664_v23 = vld [vmem:[%s1474_s10 + $0x18] sm:$0xff] }
  0x40   : > { %680 = vmatpush.msrb.mxu0 %v664_v23 }
  0x41   : > { %533 = vmatpush.msra.mxu1 %v518_v24  ;;  %v663_v24 = vld [vmem:[%s1474_s10 + $0x10] sm:$0xff] }
  0x42   : > { %681 = vmatpush.msrb.mxu0 %v663_v24 }
  0x43   : > { %534 = vmatpush.msra.mxu1 %v517_v25  ;;  %v662_v25 = vld [vmem:[%s1474_s10 + $0x8] sm:$0xff] }
  0x44   : > { %682 = vmatpush.msrb.mxu0 %v662_v25 }
  0x45   : > { %535 = vmatpush.msra.mxu1 %v516_v26  ;;  %v661_v26 = vld [vmem:[%s1474_s10] sm:$0xff] }
  0x46   : > { %683 = vmatpush.msrb.mxu0 %v661_v26 }
  0x47   : > { %536 = vmatpush.msra.mxu1 %v515_v27 }
  0x49   : > { %537 = vmatpush.msra.mxu1 %v514_v33  ;;  %v665_v33 = vld [vmem:[%s1475_s11] sm:$0x1] }
  0x4b   : > { %538 = vmatpush.msra.mxu1 %v513_v34 }
  0x4d   : > { %539 = vmatpush.msra.mxu1 %v512_v35 }
  0x4f   : > { %540 = vmatpush.msra.mxu1 %v511_v36 }
  0x51   : > { %541 = vmatpush.msra.mxu1 %v510_v37 }
  0xa1   : > { %v1245_v11 = vpop.permute.xlu0 %460 }
  0xa2   : > { %v464_v12 = vsel %vm463_vm1, %v1243_v10, %v1245_v11 }
  0xa3   : > { %857 = vmatmul.msk.f32.vlgmr.msra.gmra.mxu0 %vm474_vm2, %v464_v12 }
 0x120   : > { %v495_v14 = vpop.f32.mrf.mxu0 }
 0x121   : > { %v496_v15 = vadd.f32 %v495_v14, %v473_v13 }
 0x123   : > { %v499_v16 = vsel %vm498_vm3, %v496_v15, -inf }
 0x124   : > { %500 = vmax.xlane.f32.xlu0 %v499_v16 }
 0x197   : > { %v501_v28 = vpop.xlane.xlu0 %500 }
 0x198   : > { %v502_v29 = vsub.f32 %v496_v15, %v501_v28 }
 0x19a   : > { %v503_v30 = vmul.f32 1.442695, %v502_v29 }
 0x19c   : > { %920 = vpow2.f32 %v503_v30 }
 0x1a2   : > { %v921_v31 = vpop.eup %920 }
 0x1a3   : > { %v505_v32 = vsel %vm498_vm3, %v921_v31, 0.0 }
 0x1a4   : > { %506 = vadd.xlane.f32.xlu1 %v505_v32 }
 0x217   : > { %v507_v38 = vpop.xlane.xlu1 %506 }
 0x218   : > { %922 = vrcp.f32 %v507_v38 }
 0x21e   : > { %v923_v39 = vpop.eup %922 }
 0x21f   : > { %v509_v40 = vmul.f32 %v923_v39, %v921_v31 }
 0x221   : > { %542 = vmatmul.f32.vlgmr.msra.gmra.mxu1 %v509_v40  ;;  %703 = vst [vmem:[%s1497_s15] sm:$0x1] %v509_v40  ;;  %s966_s15 = scalar_lea.hbm %s1477_s13, 8 }
 0x29e   : > { %v543_v48 = vpop.f32.mrf.mxu1 }
 0x29f   : > { %547 = vrot.lane.b32.xlu1 %v543_v48, %s1498_s24 }
 0x311   : > { %v548_v55 = vpop.permute.xlu1 %547 }
 0x312   : > { %v550_v56 = vsel %vm463_vm1, %v1243_v10, %v548_v55 }
 0x313   : > { %858 = vmatmul.msk.f32.vlgmr.msra.gmra.mxu2 %vm474_vm2, %v550_v56 }
 0x396   : > { %v580_v61 = vpop.f32.mrf.mxu2 }
 0x397   : > { %v581_v62 = vadd.f32 %v580_v61, %v559_v60 }
 0x399   : > { %v583_v63 = vmax.f32 %v581_v62, 0.0 }
 0x39b   : > { %v584_v0 = vsel %vm463_vm1, %v583_v63, %v1245_v11 }
 0x39c   : > { %859 = vmatmul.msk.f32.vlgmr.msra.gmra.mxu3 %vm474_vm2, %v584_v0 }
 0x41f   : > { %v614_v2 = vpop.f32.mrf.mxu3 }
 0x420   : > { %v615_v3 = vadd.f32 %v614_v2, %v593_v1 }
 0x422   : > { %637 = vrot.lane.b32.xlu2 %v615_v3, %s1498_s24  ;;  %v860_v4 = vmul.f32 -1.442695, %v615_v3  ;;  %s1074_s24 = smov 64  }
 0x424   : > { %924 = vpow2.f32 %v860_v4 }
 0x42a   : > { %v925_v5 = vpop.eup %924 }
 0x42b   : > { %v620_v6 = vadd.f32 1.0, %v925_v5 }
 0x42d   : > { %926 = vrcp.f32 %v620_v6  ;;  %v632_v13 = vand.u32 2147483648, %v620_v6  ;;  %vm626_vm5 = vweird.f32 %v620_v6  ;;  %v630_v14 = vand.u32 2147483647, %v620_v6 }
 0x42f   : > { %v633_v16 = vor.u32 1.1754944e-38, %v632_v13  ;;  %vm631_vm7 = vcmp.eq.f32.partialorder %v630_v14, 8.507059e+37 }
 0x433   : > { %v927_v7 = vpop.eup %926 }
 0x434   : > { %v622_v8 = vmul.f32 %v927_v7, %v620_v6  ;;  %vm627_vm4 = vweird.f32 %v927_v7 }
 0x435   : > { %vm628_vm6 = vmor %vm626_vm5, %vm627_vm4 }
 0x436   : > { %v623_v9 = vsub.f32 1.0, %v622_v8 }
 0x438   : > { %v624_v10 = vmul.f32 %v927_v7, %v623_v9 }
 0x43a   : > { %v625_v12 = vadd.f32 %v927_v7, %v624_v10 }
 0x43c   : > { %v629_v15 = vsel %vm628_vm6, %v927_v7, %v625_v12 }
 0x43d   : > { %v634_v18 = vsel %vm631_vm7, %v633_v16, %v629_v15 }
 0x43e   : > { %v647_v27 = vsub.f32 1.0, %v634_v18  ;;  %v653_v29 = vmul.f32 %v634_v18, %v1245_v11 }
 0x47c   : > { %v638_v17 = vpop.permute.xlu2 %637 }
 0x47d   : > { %v640_v19 = vmul.f32 %v638_v17, %v634_v18 }
 0x47f   : > { %642 = vrot.lane.b32.xlu2 %v640_v19, %s1074_s24 }
 0x4d9   : > { %v643_v20 = vpop.permute.xlu2 %642 }
 0x4da   : > { %v645_v21 = vadd.f32 %v643_v20, %v615_v3 }
 0x4dc   : > { %928 = vtanh.f32 %v645_v21 }
 0x4e2   : > { %v929_v22 = vpop.eup %928 }
 0x4e3   : > { %649 = vrot.lane.b32.xlu2 %v929_v22, %s1075_s25 }
 0x53d   : > { %v650_v28 = vpop.permute.xlu2 %649 }
 0x53e   : > { %v652_v30 = vmul.f32 %v650_v28, %v647_v27 }
 0x540   : > { %v654_v31 = vadd.f32 %v653_v29, %v652_v30 }
 0x542   : > { %656 = vrot.lane.b32.xlu2 %v654_v31, %s1075_s25  ;;  %s708_s25 = sand.u32 1, %s1175_s0  }
 0x543   : > { %s1396_s19 = scalar_lea.sflag [#allocation8], %s708_s25 }
 0x59c   : > { %v657_v32 = vpop.permute.xlu2 %656 }
 0x59d   : > { %660 = vst.msk [vmem:[#allocation2] sm:$0x1] %vm659_vm8, %v657_v32  ;;  %861 = vmatmul.msk.f32.vlgmr.msrb.gmra.mxu0 %vm463_vm1, %v657_v32 }
 0x59e   : > { %702 = vst.msk [vmem:[%s1499_s30] sm:$0x1] %vm659_vm8, %v657_v32  ;;  %s960_s30 = sshra.s32 %s739_s21, 4  ;;  %s961_s30 = int_to_ptr.hbm [resolvable:$true] %s960_s30 }
 0x59f   : > { %s962_s24 = scalar_lea.hbm %s961_s30, 1  ;;  %p967_p2 = scmp.lt.s32.totalorder %s961_s30, %s1477_s13 }
 0x5a0   : > { %p963_p13 = scmp.ne.s32.totalorder %s961_s30, %s962_s24  ;;  %p968_p3 = scmp.lt.s32.totalorder %s966_s15, %s962_s24 }
 0x5a2   : > { %p964_p0 = pnand %p963_p13, %p1194_p5  ;;  %p969_p4 = por %p968_p3, %p967_p2 }
 0x5a4   : > { %p965_p1 = pneg %p964_p0 }
 0x5a6   : > { %p970_p7 = pnand %p969_p4, %p965_p1 }
 0x61a   : > { %v685_v34 = vpop.f32.mrf.mxu0 }
 0x61b   : > { %v686_v35 = vadd.f32 %v685_v34, %v665_v33 }
 0x61d   : > { %v688_v11 = vsel %vm498_vm3, %v686_v35, -inf }
 0x61e   : > { %689 = vmax.xlane.f32.xlu2 %v688_v11 }
 0x691   : > { %v690_v36 = vpop.xlane.xlu2 %689 }
 0x692   : > { %v691_v37 = vsub.f32 %v686_v35, %v690_v36 }
 0x694   : > { %v692_v38 = vmul.f32 1.442695, %v691_v37 }
 0x696   : > { %930 = vpow2.f32 %v692_v38 }
 0x69c   : > { %v931_v39 = vpop.eup %930 }
 0x69d   : > { %v694_v40 = vsel %vm498_vm3, %v931_v39, 0.0 }
 0x69e   : > { %695 = vadd.xlane.f32.xlu1 %v694_v40 }
 0x69f   : > { %973 = shalt.err (!%p970_p7)
}
 0x6a0   : > { %867 = dma.vmem_to_hbm [thread:$0]  (%p1194_p5), %s737_s23, 16, %s739_s21, %s1396_s19  }
 0x6a1   : > { %s747_s29 = scalar_lea.hbm %s1478_s14, %s1175_s0  ;;  %s1501_s1 = scalar_lea.vmem [#allocation9], %s1205_s28 }
 0x6a2   : > { %s749_s4 = sshll.u32 %s1501_s1, 4  ;;  %s751_s5 = sshll.u32 %s747_s29, 4  ;;  %s750_s4 = int_to_ptr.vmem [resolvable:$true] %s749_s4  ;;  %s752_s5 = int_to_ptr.hbm [resolvable:$true] %s751_s5 }
 0x6a3   : > { %s988_s3 = sshra.s32 %s752_s5, 4  ;;  %s994_s23 = scalar_lea.hbm %s1478_s14, 8  ;;  %s989_s3 = int_to_ptr.hbm [resolvable:$true] %s988_s3 }
 0x6a4   : > { %s990_s30 = scalar_lea.hbm %s989_s3, 1  ;;  %p995_p11 = scmp.lt.s32.totalorder %s989_s3, %s1478_s14 }
 0x6a5   : > { %p991_p8 = scmp.ne.s32.totalorder %s989_s3, %s990_s30  ;;  %p996_p12 = scmp.lt.s32.totalorder %s994_s23, %s990_s30 }
 0x6a7   : > { %p992_p9 = pnand %p991_p8, %p1194_p5  ;;  %p997_p13 = por %p996_p12, %p995_p11 }
 0x6a9   : > { %p993_p10 = pneg %p992_p9 }
 0x6ab   : > { %p998_p0 = pnand %p997_p13, %p993_p10 }
 0x6ad   : > { %1001 = shalt.err (!%p998_p0)
}
 0x6ae   : > { %868 = dma.vmem_to_hbm [thread:$0]  (%p1194_p5), %s750_s4, 16, %s752_s5, %s1396_s19  }
 0x6af   : > { %s721_s29 = scalar_lea.hbm %s1476_s12, %s1175_s0  ;;  %s1502_s1 = scalar_lea.vmem [#allocation5], %s1205_s28 }
 0x6b0   : > { %s723_s3 = sshll.u32 %s1502_s1, 4  ;;  %s725_s30 = sshll.u32 %s721_s29, 4  ;;  %s724_s3 = int_to_ptr.vmem [resolvable:$true] %s723_s3  ;;  %s726_s30 = int_to_ptr.hbm [resolvable:$true] %s725_s30 }
 0x6b1   : > { %s1503_s24 = smov %s1502_s1  ;;  %s705_s15 = scalar_lea.sflag [#allocation6], %s1205_s28 }
 0x6b2   : > { %s1016_s4 = sshra.s32 %s726_s30, 4  ;;  %s1022_s23 = scalar_lea.hbm %s1476_s12, 8  ;;  %s1017_s4 = int_to_ptr.hbm [resolvable:$true] %s1016_s4 }
 0x6b3   : > { %s1018_s5 = scalar_lea.hbm %s1017_s4, 1  ;;  %p1023_p4 = scmp.lt.s32.totalorder %s1017_s4, %s1476_s12 }
 0x6b4   : > { %p1019_p1 = scmp.ne.s32.totalorder %s1017_s4, %s1018_s5  ;;  %p1024_p7 = scmp.lt.s32.totalorder %s1022_s23, %s1018_s5 }
 0x6b6   : > { %p1020_p2 = pnand %p1019_p1, %p1194_p5  ;;  %p1025_p8 = por %p1024_p7, %p1023_p4 }
 0x6b8   : > { %p1021_p3 = pneg %p1020_p2 }
 0x6ba   : > { %p1026_p9 = pnand %p1025_p8, %p1021_p3 }
 0x711   : > { %v696_v41 = vpop.xlane.xlu1 %695 }
 0x712   : > { %932 = vlog2.f32 %v696_v41 }
 0x718   : > { %v933_v42 = vpop.eup %932 }
 0x719   : > { %v698_v43 = vmul.f32 0.6931472, %v933_v42 }
 0x71b   : > { %v699_v44 = vadd.f32 %v698_v43, %v690_v36 }
 0x71d   : > { %v700_v45 = vsub.f32 %v686_v35, %v699_v44 }
 0x71f   : > { %701 = vst [vmem:[%s1503_s24] sm:$0x1] %v700_v45 }
 0x720   : > { %1029 = shalt.err (!%p1026_p9)
}
 0x721   : > { %866 = dma.vmem_to_hbm [thread:$0]  (%p1194_p5), %s724_s3, 16, %s726_s30, %s705_s15  }
 0x722 PF: > { %p882_p10 = scmp.ge.s32.totalorder %s1070_s20, 2  ;;  %s763_s28 = sand.u32 1, %s1058_s17  }
 0x723   : > { %s764_s25 = scalar_lea.sflag [#allocation6], %s763_s28 }
 0x724   : > { %p873_p11 = pnand %p882_p10, %p1198_p6 }
 0x726   : > { %p874_p12 = pneg %p873_p11 }
 0x728   : > { %1049 = dma.done.wait (%p874_p12), %s764_s25, 16  }
 0x729   : > { %1051 = vsyncadd (%p874_p12), %s764_s25, 4294967280  ;;  %s1504_s2 = sadd.s32 4294967294, %s1070_s20  }
 0x72a   : > { %s772_s29 = sand.u32 1, %s1504_s2  }
 0x72b   : > { %s773_s1 = scalar_lea.sflag [#allocation8], %s772_s29 }
 0x72c   : > { %1053 = dma.done.wait (%p874_p12), %s773_s1, 32  }
 0x72d   : > { %1055 = vsyncadd (%p874_p12), %s773_s1, 4294967264  ;;  %s1505_s26 = sld [smem:[#allocation13_spill]]  ;;  %p36_p5 = scmp.ge.s32.totalorder %s1179_s22, 10  }
 0x72e   : > { %s1506_s19 = sld [smem:[#allocation14_spill]]  ;;  %s1507_s17 = smov %s1062_s18 }
 0x72f   : > { %s1509_s20 = smov %s1179_s22  ;;  %38 = sbr.rel (!%p36_p5) target bundleno = 15 (0xf), region = 133 }
 0x733   : > { %s1508_s18 = smov %s1505_s26 }
 0x734   :  { %787 = vsyncpa [#allocation6], 1 }
 0x735   :  { %789 = vsyncpa [#allocation6 + $0x1], 1 }
 0x736   :  { %790 = vsyncpa [#allocation8], 1 }
 0x737   :  { %792 = vsyncpa [#allocation8 + $0x1], 1 }

</bundles_post_ra>
